<compile_context>
chip_gen: v6e
topology: v6e:2x2x1
jax: 0.10.0
libtpu: 0.0.40
codegen_flags: <defaults>
</compile_context>

<pallas_src>
import functools

import jax
import jax.numpy as jnp
from jax import lax
from jax.experimental import pallas as pl
from jax.experimental.pallas import tpu as pltpu


def _round_up(n, m):
    return ((n + m - 1) // m) * m


def _pick_tile_b(batch, feat_dim, x_itemsize, num_classes,
                 vmem_budget_bytes=20 * 1024 * 1024):
    """Largest batch tile (multiple of 8, <=4096) fitting a conservative VMEM budget."""
    lanes_d = _round_up(max(feat_dim, 1), 128)       # last dim pads to 128 lanes
    lanes_c = _round_up(max(num_classes, 1), 128)
    per_row = (
        2 * lanes_d * x_itemsize                      # x tile, double-buffered
        + 2 * 128 * 4                                 # labels (B,1) int32 tile, double-buffered
        + 2 * 128 * 4                                 # output accumulator block
        + (3 * lanes_d + lanes_c + 2 * 128) * 4       # f32 intermediates (x, cg, diff, onehot, d)
    )
    centers_bytes = 2 * _round_up(max(num_classes, 8), 8) * lanes_d * 4
    budget = max(vmem_budget_bytes - centers_bytes, per_row * 8)
    tile = budget // per_row
    tile = max(8, min(4096, tile))
    tile = min(tile, _round_up(batch, 8))
    return max(8, (tile // 8) * 8)


def _center_loss_kernel(x_ref, lbl_ref, centers_ref, acc_ref, *,
                        batch_size, tile_b, tiles_per_split, num_classes):
    """Per tile: acc[b_local] += clamp(||x[b] - centers[labels[b]]||^2, 1e-12, 1e12)."""
    c = pl.program_id(0)          # batch split (parallel -> megacore on v7x)
    i = pl.program_id(1)          # tile within split (reduction)

    @pl.when(i == 0)
    def _init():
        acc_ref[...] = jnp.zeros_like(acc_ref)

    x = x_ref[...].astype(jnp.float32)                  # (tile_b, D)
    centers = centers_ref[...].astype(jnp.float32)      # (C, D), VMEM-resident
    lbl = lbl_ref[...]                                   # (tile_b, 1) int32

    # One-hot gather of the assigned centers on the MXU (f32 so it lowers on
    # v7x, which has no integer MXU path).
    cls = lax.broadcasted_iota(jnp.int32, (tile_b, num_classes), 1)
    onehot = (lbl == cls).astype(jnp.float32)            # (tile_b, C)
    cg = jnp.dot(onehot, centers,
                 preferred_element_type=jnp.float32)     # (tile_b, D)

    diff = x - cg
    d = jnp.sum(diff * diff, axis=1, keepdims=True)      # (tile_b, 1)
    d = jnp.clip(d, 1e-12, 1e12)

    # Zero rows past the true batch (ragged last tile and clamped overflow
    # tiles).  Select AFTER the per-row sum so garbage NaN/Inf cannot leak.
    row0 = (c * tiles_per_split + i) * tile_b
    row = row0 + lax.broadcasted_iota(jnp.int32, (tile_b, 1), 0)
    d = jnp.where(row < batch_size, d, jnp.float32(0.0))

    # Lane-resident per-slot accumulator: plain VPU adds, no per-step
    # cross-sublane reduce-to-scalar.
    acc_ref[...] = acc_ref[...] + d.reshape(1, tile_b, 1)


def center_loss(x, centers, labels, *, tile_b=None):
    """x: (B, D) float, centers: (C, D) float, labels: (B,) int -> scalar loss."""
    B, D = x.shape
    C, D2 = centers.shape
    assert D == D2
    labels2d = labels.astype(jnp.int32).reshape(B, 1)

    if tile_b is None:
        tile_b = _pick_tile_b(B, D, jnp.dtype(x.dtype).itemsize, C)
    tiles_total = -(-B // tile_b)
    num_splits = 2 if tiles_total >= 2 else 1            # 2 TCs on v7x; no harm elsewhere
    tiles_per_split = -(-tiles_total // num_splits)
    last_tile = tiles_total - 1

    def tile_map(c, i):
        # Clamp overflow tiles (when tiles_total is not a multiple of num_splits)
        # to the last valid tile -> DMA always in bounds; their rows are masked
        # out inside the kernel via the unclamped row index.
        t = jnp.minimum(c * tiles_per_split + i, last_tile)
        return (t, 0)

    kernel = functools.partial(
        _center_loss_kernel, batch_size=B, tile_b=tile_b,
        tiles_per_split=tiles_per_split, num_classes=C)

    partials = pl.pallas_call(
        kernel,
        out_shape=jax.ShapeDtypeStruct((num_splits, tile_b, 1), jnp.float32),
        grid_spec=pltpu.PrefetchScalarGridSpec(
            num_scalar_prefetch=0,
            grid=(num_splits, tiles_per_split),
            in_specs=[
                pl.BlockSpec((tile_b, D), tile_map),            # x tile
                pl.BlockSpec((tile_b, 1), tile_map),            # labels tile
                pl.BlockSpec((C, D), lambda c, i: (0, 0)),      # resident centers table
            ],
            # Same (c, 0, 0) block across the reduction axis -> resident accumulator.
            out_specs=pl.BlockSpec((1, tile_b, 1), lambda c, i: (c, 0, 0)),
        ),
        compiler_params=pltpu.CompilerParams(
            dimension_semantics=("parallel", "arbitrary"),
            vmem_limit_bytes=32 * 1024 * 1024,
        ),
    )(x, labels2d, centers)

    return jnp.sum(partials) / jnp.float32(B)


def center_loss_ref(x, centers, labels):
    """Pure-JAX reference matching the PyTorch forward (full distmat + mask)."""
    B = x.shape[0]
    C = centers.shape[0]
    x = x.astype(jnp.float32)
    c = centers.astype(jnp.float32)
    distmat = (
        jnp.sum(x * x, axis=1, keepdims=True)
        + jnp.sum(c * c, axis=1, keepdims=True).T
        - 2.0 * x @ c.T
    )
    mask = labels[:, None] == jnp.arange(C)[None, :]
    dist = jnp.where(mask, jnp.clip(distmat, 1e-12, 1e12), 0.0)
    return jnp.sum(dist) / B


if __name__ == "__main__":
    num_classes = 10
    feat_dim = 2

    key = jax.random.PRNGKey(0)
    k_c, k_x, k_l = jax.random.split(key, 3)

    # Module parameter init is torch.randn(num_classes, feat_dim).
    centers = jax.random.normal(k_c, (num_classes, feat_dim), dtype=jnp.float32)

    # Case 1: batch fits in one tile.
    batch = 8
    x = jax.random.normal(k_x, (batch, feat_dim), dtype=jnp.float32)
    labels = jax.random.randint(k_l, (batch,), 0, num_classes, dtype=jnp.int32)
    loss = center_loss(x, centers, labels)
    jax.block_until_ready(loss)
    loss_ref = center_loss_ref(x, centers, labels)
    assert jnp.allclose(loss, loss_ref, rtol=1e-5, atol=1e-5), (loss, loss_ref)

    # Case 2: ragged batch, even tile count -> exercises the 2-way split + partial block.
    batch2 = 13
    k_x2, k_l2 = jax.random.split(k_x)
    x2 = jax.random.normal(k_x2, (batch2, feat_dim), dtype=jnp.float32)
    labels2 = jax.random.randint(k_l2, (batch2,), 0, num_classes, dtype=jnp.int32)
    loss2 = center_loss(x2, centers, labels2, tile_b=8)
    jax.block_until_ready(loss2)
    loss2_ref = center_loss_ref(x2, centers, labels2)
    assert jnp.allclose(loss2, loss2_ref, rtol=1e-5, atol=1e-5), (loss2, loss2_ref)

    # Case 3: odd tile count -> exercises index-map clamping of overflow tiles.
    batch3 = 20
    k_x3, k_l3 = jax.random.split(k_l)
    x3 = jax.random.normal(k_x3, (batch3, feat_dim), dtype=jnp.float32)
    labels3 = jax.random.randint(k_l3, (batch3,), 0, num_classes, dtype=jnp.int32)
    loss3 = center_loss(x3, centers, labels3, tile_b=8)
    jax.block_until_ready(loss3)
    loss3_ref = center_loss_ref(x3, centers, labels3)
    assert jnp.allclose(loss3, loss3_ref, rtol=1e-5, atol=1e-5), (loss3, loss3_ref)

    print("KERNEL_OK")
</pallas_src>

<mosaic_0001>
module attributes {stable_mosaic.version = 11 : i64} {
  func.func @_center_loss_kernel(%arg0: i32, %arg1: i32, %arg2: memref<8x2xf32, #tpu.memory_space<vmem>>, %arg3: memref<8x1xi32, #tpu.memory_space<vmem>>, %arg4: memref<10x2xf32, #tpu.memory_space<vmem>>, %arg5: memref<1x8x1xf32, #tpu.memory_space<vmem>>) attributes {dimension_semantics = [#tpu.dimension_semantics<parallel>, #tpu.dimension_semantics<arbitrary>], iteration_bounds = array<i64: 1, 1>, scalar_prefetch = 0 : i64, scratch_operands = 0 : i64, tpu.core_type = #tpu.core_type<tc>, window_params = [{transform_indices = @transform_0, window_bounds = array<i64: 8, 2>}, {transform_indices = @transform_1, window_bounds = array<i64: 8, 1>}, {pipeline_mode = #tpu.pipeline_mode<synchronous>, transform_indices = @transform_2, window_bounds = array<i64: 10, 2>}, {transform_indices = @transform_3, window_bounds = array<i64: 1, 8, 1>}]} {
    %c0_i32 = arith.constant 0 : i32
    %0 = arith.cmpi eq, %arg1, %c0_i32 : i32
    %1 = arith.extui %0 : i1 to i32
    %c0_i32_0 = arith.constant 0 : i32
    %2 = arith.cmpi ne, %1, %c0_i32_0 : i32
    scf.if %2 {
      %cst_17 = arith.constant 0.000000e+00 : f32
      %34 = vector.broadcast %cst_17 : f32 to vector<1x8x1xf32>
      %c0_18 = arith.constant 0 : index
      %c0_19 = arith.constant 0 : index
      %c0_20 = arith.constant 0 : index
      %35 = vector.load %arg5[%c0_18, %c0_19, %c0_20] : memref<1x8x1xf32, #tpu.memory_space<vmem>>, vector<1x8x1xf32>
      tpu.vector_store %arg5[%c0_18, %c0_19, %c0_20], %34 {strides = array<i32>} : memref<1x8x1xf32, #tpu.memory_space<vmem>>, vector<1x8x1xf32>,
    } else {
    }
    %c0 = arith.constant 0 : index
    %c0_1 = arith.constant 0 : index
    %3 = vector.load %arg2[%c0, %c0_1] : memref<8x2xf32, #tpu.memory_space<vmem>>, vector<8x2xf32>
    %c0_2 = arith.constant 0 : index
    %c0_3 = arith.constant 0 : index
    %4 = vector.load %arg4[%c0_2, %c0_3] : memref<10x2xf32, #tpu.memory_space<vmem>>, vector<10x2xf32>
    %c0_4 = arith.constant 0 : index
    %c0_5 = arith.constant 0 : index
    %5 = vector.load %arg3[%c0_4, %c0_5] : memref<8x1xi32, #tpu.memory_space<vmem>>, vector<8x1xi32>
    %6 = tpu.iota {dimensions = array<i32: 1>} : vector<8x10xi32>
    %7 = vector.broadcast %5 : vector<8x1xi32> to vector<8x10xi32>
    %8 = arith.cmpi eq, %7, %6 : vector<8x10xi32>
    %9 = arith.extui %8 : vector<8x10xi1> to vector<8x10xi32>
    %10 = arith.sitofp %9 : vector<8x10xi32> to vector<8x10xf32>
    %cst = arith.constant dense<0.000000e+00> : vector<8x2xf32>
    %11 = tpu.matmul %10, %4, %cst {dimension_numbers = #tpu.dot_dimension_numbers<[1], [0], [0], [1], [0, 0, 1, 1], [], []>} : vector<8x10xf32>, vector<10x2xf32>, vector<8x2xf32> -> vector<8x2xf32>
    %12 = arith.subf %3, %11 : vector<8x2xf32>
    %13 = arith.mulf %12, %12 : vector<8x2xf32>
    %cst_6 = arith.constant dense<0.000000e+00> : vector<8xf32>
    %14 = vector.multi_reduction <add>, %13, %cst_6 [1] : vector<8x2xf32> to vector<8xf32>
    %15 = vector.shape_cast %14 : vector<8xf32> to vector<8x1xf32>
    %cst_7 = arith.constant 9.99999996E-13 : f32
    %cst_8 = arith.constant 9.99999995E+11 : f32
    %16 = vector.broadcast %cst_7 : f32 to vector<8x1xf32>
    %17 = arith.maximumf %16, %15 : vector<8x1xf32>
    %18 = vector.broadcast %cst_8 : f32 to vector<8x1xf32>
    %19 = arith.minimumf %18, %17 : vector<8x1xf32>
    %c1_i32 = arith.constant 1 : i32
    %20 = arith.muli %arg0, %c1_i32 : i32
    %21 = arith.addi %20, %arg1 : i32
    %c8_i32 = arith.constant 8 : i32
    %22 = arith.muli %21, %c8_i32 : i32
    %23 = tpu.iota {dimensions = array<i32: 0>} : vector<8x1xi32>
    %24 = vector.broadcast %22 : i32 to vector<8x1xi32>
    %25 = arith.addi %24, %23 : vector<8x1xi32>
    %c8_i32_9 = arith.constant 8 : i32
    %26 = vector.broadcast %c8_i32_9 : i32 to vector<8x1xi32>
    %27 = arith.cmpi slt, %25, %26 : vector<8x1xi32>
    %cst_10 = arith.constant 0.000000e+00 : f32
    %28 = vector.broadcast %cst_10 : f32 to vector<8x1xf32>
    %29 = arith.select %27, %19, %28 : vector<8x1xi1>, vector<8x1xf32>
    %c0_11 = arith.constant 0 : index
    %c0_12 = arith.constant 0 : index
    %c0_13 = arith.constant 0 : index
    %30 = vector.load %arg5[%c0_11, %c0_12, %c0_13] : memref<1x8x1xf32, #tpu.memory_space<vmem>>, vector<1x8x1xf32>
    %31 = vector.shape_cast %29 : vector<8x1xf32> to vector<1x8x1xf32>
    %32 = arith.addf %30, %31 : vector<1x8x1xf32>
    %c0_14 = arith.constant 0 : index
    %c0_15 = arith.constant 0 : index
    %c0_16 = arith.constant 0 : index
    %33 = vector.load %arg5[%c0_14, %c0_15, %c0_16] : memref<1x8x1xf32, #tpu.memory_space<vmem>>, vector<1x8x1xf32>
    tpu.vector_store %arg5[%c0_14, %c0_15, %c0_16], %32 {strides = array<i32>} : memref<1x8x1xf32, #tpu.memory_space<vmem>>, vector<1x8x1xf32>,
    return
  }
  func.func @transform_0(%arg0: i32, %arg1: i32) -> (i32, i32) {
    %c1_i32 = arith.constant 1 : i32
    %0 = arith.muli %arg0, %c1_i32 : i32
    %1 = arith.addi %0, %arg1 : i32
    %c0_i32 = arith.constant 0 : i32
    %2 = arith.minsi %1, %c0_i32 : i32
    %c0_i32_0 = arith.constant 0 : i32
    %c0_i32_1 = arith.constant 0 : i32
    return %2, %c0_i32_0 : i32, i32
  }
  func.func @transform_1(%arg0: i32, %arg1: i32) -> (i32, i32) {
    %c1_i32 = arith.constant 1 : i32
    %0 = arith.muli %arg0, %c1_i32 : i32
    %1 = arith.addi %0, %arg1 : i32
    %c0_i32 = arith.constant 0 : i32
    %2 = arith.minsi %1, %c0_i32 : i32
    %c0_i32_0 = arith.constant 0 : i32
    %c0_i32_1 = arith.constant 0 : i32
    return %2, %c0_i32_0 : i32, i32
  }
  func.func @transform_2(%arg0: i32, %arg1: i32) -> (i32, i32) {
    %c0_i32 = arith.constant 0 : i32
    %c0_i32_0 = arith.constant 0 : i32
    %c0_i32_1 = arith.constant 0 : i32
    return %c0_i32, %c0_i32_0 : i32, i32
  }
  func.func @transform_3(%arg0: i32, %arg1: i32) -> (i32, i32, i32) {
    %c0_i32 = arith.constant 0 : i32
    %c0_i32_0 = arith.constant 0 : i32
    %c0_i32_1 = arith.constant 0 : i32
    return %arg0, %c0_i32, %c0_i32_0 : i32, i32, i32
  }
}

</mosaic_0001>

<bundles_post_ra>
// kernel: tpu_custom_call.1
= control target key start
LH: loop header
LB: loop body
LE: loop exit
PB: predicated region body
PF: predicated region fallthrough
CT: control target
= control target key end

     0   :  { %vm90_vm0 = vcmask 1041408   ;;  %v217_v0 = vmov 0   ;;  %v218_v2 = vmov 0.0   ;;  %vm219_vm1 = vmmov 0   ;;  %s263_s1 = inlined_call_operand.vmem [shape: s32[8,1], index: 1, kind: input, shape index: {}]   ;;  %s264_s2 = inlined_call_operand.vmem [shape: f32[10,2], index: 2, kind: input, shape index: {}]   ;;  %s265_s3 = inlined_call_operand.vmem [shape: f32[1,8,1], index: 3, kind: output, shape index: {}]   ;;  %s266_s0 = inlined_call_operand.vmem [shape: f32[8,2], index: 0, kind: input, shape index: {}]  }
   0x1   :  { %216 = vset.pattern.permute.xlu0 %v217_v0  ;;  %v77_v1 = vld [vmem:[%s263_s1] sm:$0xff]  ;;  %206 = vmatprep.subr.mxu0 %v218_v2  ;;  %v76_v3 = vld [vmem:[%s264_s2 + $0x8] sm:$0x3]  ;;  %v78_v5 = vlaneseq  ;;  %vm86_vm2 = vcmask 80896   ;;  %vm72_vm4 = vcmask 7168   ;;  %vm166_vm5 = vcmask 15360  }
   0x2   :  { %v75_v4 = vld [vmem:[%s264_s2] sm:$0xff]  ;;  %81 = vperm.xlu0 %216, %v77_v1   ;;  %207 = vmatpush3.msk.msra.mxu0 %vm90_vm0, %v76_v3  ;;  %73 = vst.msk [vmem:[%s265_s3] sm:$0xff] %vm72_vm4, %v218_v2 }
   0x3   :  { %208 = vmatprep.subr.mxu0 %v218_v2  ;;  %210 = vmatprep.mubr.msk.f32.mxu0 %vm219_vm1, %v218_v2  ;;  %v79_v6 = vand.u32 127, %v78_v5  ;;  %v74_v9 = vld [vmem:[%s266_s0] sm:$0xff] }
   0x4   :  { %209 = vmatpush3.msra.mxu0 %v75_v4 }
   0x9   :  { %v180_v17 = vld [vmem:[%s265_s3] sm:$0xff] }
  0x7d   :  { %v82_v7 = vpop.permute.xlu0 %81 }
  0x7e   :  { %vm83_vm3 = vcmp.eq.s32.totalorder %v82_v7, %v79_v6 }
  0x7f   :  { %v200_v8 = vsel %vm83_vm3, 1.0, %v218_v2 }
  0x80   :  { %211 = vmatmul.mubr.msk.f32.vlgmr.msra.gmra.mxu0 %vm86_vm2, %v200_v8 }
 0x140   :  { %v160_v10 = vpop.f32.mrf.mxu0 }
 0x141   :  { %v164_v11 = vsub.f32 %v74_v9, %v160_v10 }
 0x142   :  { %v212_v12 = vpop.f32.mrf.mxu0 }
 0x143   :  { %v165_v13 = vmul.f32 %v164_v11, %v164_v11 }
 0x145   :  { %v167_v14 = vsel %vm166_vm5, %v165_v13, 0.0 }
 0x146   :  { %168 = vadd.xlane.f32.xlu0 %v167_v14 }
 0x1cf   :  { %v169_v15 = vpop.xlane.xlu0 %168 }
 0x1d0   :  { %v170_v16 = vmax.f32 %v169_v15, 1e-12 }
 0x1d2   :  { %v171_v18 = vmin.f32 %v170_v16, 1e+12 }
 0x1d4   :  { %v181_v19 = vadd.f32 %v180_v17, %v171_v18 }
 0x1d6   :  { %183 = vst.msk [vmem:[%s265_s3] sm:$0xff] %vm72_vm4, %v181_v19 }

</bundles_post_ra>
